<compile_context>
chip_gen: v7x
topology: tpu7x:2x2x1
jax: 0.10.0
libtpu: 0.0.40
codegen_flags: <defaults>
</compile_context>

<pallas_src>
import jax
import jax.numpy as jnp
from jax import lax
from jax.experimental import pallas as pl
from jax.experimental.pallas import tpu as pltpu

LANE = 128
SUBLANES = 8
DEFAULT_SUB_ROWS = 256          # rows per inner fori_loop chunk (32 f32 vregs)
MAX_BLOCK_ROWS = 4096           # (4096, 128) f32 = 2 MiB per input block
VMEM_LIMIT_BYTES = 40 * 1024 * 1024


def _round_up(x, m):
    return (x + m - 1) // m * m


def _num_tensorcores():
    """Best-effort TensorCore count (1 on v5e/v6e, 2 on v7x); correctness does
    not depend on this value, only load balance does."""
    try:
        info = pltpu.get_tpu_info()
        for name in ("num_cores", "core_count", "num_tensorcores",
                     "tensorcore_count", "cores_per_chip"):
            v = getattr(info, name, None)
            if v is not None:
                v = int(v)
                if v > 0:
                    return min(v, 2)
    except Exception:
        pass
    try:
        if "v7" in jax.devices()[0].device_kind.lower():
            return 2
    except Exception:
        pass
    return 1


def _row_align(dtype):
    # Sub-32-bit dtypes pack along sublanes: keep the block's second-minor dim
    # a multiple of the packed tile height.
    return {4: 8, 2: 16, 1: 32}.get(jnp.dtype(dtype).itemsize, 8)


def _plan(rows, num_partials, row_align):
    """Pick (block_rows, sub_rows, nblocks, steps) for the 2-D grid."""
    sub_default = _round_up(DEFAULT_SUB_ROWS, row_align)
    rows_per_partial = pl.cdiv(rows, num_partials)
    if rows_per_partial <= sub_default:
        block_rows = _round_up(max(rows_per_partial, 1), row_align)
        sub_rows = block_rows
    else:
        sub_rows = sub_default
        block_rows = min(_round_up(MAX_BLOCK_ROWS, sub_rows),
                         _round_up(rows_per_partial, sub_rows))
    nblocks = pl.cdiv(rows, block_rows)
    steps = pl.cdiv(nblocks, num_partials)
    return block_rows, sub_rows, nblocks, steps


def _make_bce_kernel(*, block_rows, sub_rows, steps, total_rows, needs_mask):
    n_sub = block_rows // sub_rows
    unroll = n_sub <= 8

    def kernel(res_ref, ref_ref, o_ref):
        c = pl.program_id(0)
        i = pl.program_id(1)

        @pl.when(i == 0)
        def _():
            o_ref[...] = jnp.zeros_like(o_ref)

        # Unclamped global row of this block's first row.  The index_map clamps
        # the DMA into bounds; any rows past total_rows are masked below.
        block_row0 = (c * steps + i) * block_rows

        def body(j, acc):
            r0 = pl.multiple_of(j * sub_rows, sub_rows)
            # Native-dtype loads; upcast on the VPU (halves HBM traffic for bf16).
            r = res_ref[pl.ds(r0, sub_rows), :].astype(jnp.float32)
            t = ref_ref[pl.ds(r0, sub_rows), :].astype(jnp.float32)
            if needs_mask:
                row_ids = (block_row0 + r0
                           + lax.broadcasted_iota(jnp.int32, (sub_rows, 1), 0))
                valid = row_ids < total_rows
                # res = ref = 1 is exactly loss-neutral under the -100 clamp.
                r = jnp.where(valid, r, 1.0)
                t = jnp.where(valid, t, 1.0)
            # PyTorch clamps each log term at -100 so res in {0, 1} stays finite.
            log_r = jnp.maximum(jnp.log(r), -100.0)
            log_1mr = jnp.maximum(jnp.log1p(-r), -100.0)
            # -(t*log_r + (1-t)*log_1mr) == -(log_1mr + t*(log_r - log_1mr))
            loss = -(log_1mr + t * (log_r - log_1mr))
            # Reduce only across whole (8, 128) vregs -> pure VPU adds; no XLU.
            return acc + jnp.sum(loss.reshape(-1, SUBLANES, LANE), axis=0)

        part = lax.fori_loop(0, n_sub, body,
                             jnp.zeros((SUBLANES, LANE), jnp.float32),
                             unroll=unroll)
        # Output block index is constant along the reduction axis -> resident
        # in VMEM; acts as the accumulator (no scratch, written back at the end).
        o_ref[...] += part

    return kernel


def bce_loss(res, ref):
    """Mean binary cross entropy over all elements of res/ref (same shape)."""
    assert res.shape == ref.shape, "res and ref must have the same shape"
    n = res.size
    if n == 0:
        return jnp.float32(jnp.nan)   # matches torch's mean over empty input

    res_flat = res.reshape(-1)
    ref_flat = ref.reshape(-1)

    row_align = max(_row_align(res.dtype), _row_align(ref.dtype))

    # Only a sub-128-element remainder is padded (loss-neutral values).
    rem = n % LANE
    if rem:
        # TODO(synk): for huge inputs whose size is not a multiple of 128, handle
        # the flat tail in a tiny second call instead of this full-array copy.
        pad = LANE - rem
        res_flat = jnp.pad(res_flat, (0, pad), constant_values=1)
        ref_flat = jnp.pad(ref_flat, (0, pad), constant_values=1)

    rows = res_flat.size // LANE
    res2d = res_flat.reshape(rows, LANE)
    ref2d = ref_flat.reshape(rows, LANE)

    num_partials = max(1, min(_num_tensorcores(), pl.cdiv(rows, row_align)))
    block_rows, sub_rows, nblocks, steps = _plan(rows, num_partials, row_align)
    needs_mask = (num_partials * steps * block_rows) != rows

    kernel = _make_bce_kernel(block_rows=block_rows, sub_rows=sub_rows,
                              steps=steps, total_rows=rows,
                              needs_mask=needs_mask)

    # Clamp so an undersized partial never issues a fully out-of-bounds DMA;
    # its (duplicate) rows are masked to zero contribution inside the kernel.
    in_map = lambda c, i: (jnp.minimum(c * steps + i, nblocks - 1), 0)

    in_bytes = (jnp.dtype(res.dtype).itemsize + jnp.dtype(ref.dtype).itemsize)
    cost = pl.CostEstimate(
        flops=7 * n,
        transcendentals=2 * n,
        bytes_accessed=n * in_bytes + num_partials * SUBLANES * LANE * 4,
    )

    partials = pl.pallas_call(
        kernel,
        out_shape=jax.ShapeDtypeStruct((num_partials * SUBLANES, LANE),
                                       jnp.float32),
        grid_spec=pltpu.PrefetchScalarGridSpec(
            num_scalar_prefetch=0,
            grid=(num_partials, steps),
            in_specs=[
                pl.BlockSpec((block_rows, LANE), in_map),
                pl.BlockSpec((block_rows, LANE), in_map),
            ],
            out_specs=pl.BlockSpec((SUBLANES, LANE), lambda c, i: (c, 0)),
        ),
        compiler_params=pltpu.CompilerParams(
            dimension_semantics=("parallel", "arbitrary"),
            vmem_limit_bytes=VMEM_LIMIT_BYTES),
        cost_estimate=cost,
    )(res2d, ref2d)

    mean = jnp.sum(partials) / jnp.float32(n)
    if jnp.issubdtype(jnp.dtype(res.dtype), jnp.floating):
        mean = mean.astype(res.dtype)
    return mean


if __name__ == "__main__":
    key = jax.random.PRNGKey(0)
    k1, k2 = jax.random.split(key)

    # Small NCHW-shaped inputs; res must be a probability in [0, 1].
    shape = (2, 4, 16, 16)
    res = jax.nn.sigmoid(jax.random.normal(k1, shape, dtype=jnp.float32))
    ref = jax.random.uniform(k2, shape, dtype=jnp.float32)

    loss = jax.block_until_ready(bce_loss(res, ref))

    # Pure-JAX reference check (same clamp-at--100 semantics as PyTorch).
    log_r = jnp.maximum(jnp.log(res), -100.0)
    log_1mr = jnp.maximum(jnp.log1p(-res), -100.0)
    expected = jnp.mean(-(ref * log_r + (1.0 - ref) * log_1mr))
    assert jnp.allclose(loss, expected, rtol=1e-5, atol=1e-5), (loss, expected)

    # Also exercise a ragged, non-divisible size (masked-tail path).
    n2 = 7 * 333  # not a multiple of 128 rows once reshaped
    res2 = jax.nn.sigmoid(jax.random.normal(k1, (n2,), dtype=jnp.float32))
    ref2 = jax.random.uniform(k2, (n2,), dtype=jnp.float32)
    loss2 = jax.block_until_ready(bce_loss(res2, ref2))
    lr2 = jnp.maximum(jnp.log(res2), -100.0)
    l1r2 = jnp.maximum(jnp.log1p(-res2), -100.0)
    exp2 = jnp.mean(-(ref2 * lr2 + (1.0 - ref2) * l1r2))
    assert jnp.allclose(loss2, exp2, rtol=1e-5, atol=1e-5), (loss2, exp2)

    print("KERNEL_OK")
</pallas_src>

<mosaic_0001>
module attributes {stable_mosaic.version = 11 : i64} {
  func.func @kernel(%arg0: i32, %arg1: i32, %arg2: memref<16x128xf32, #tpu.memory_space<vmem>>, %arg3: memref<16x128xf32, #tpu.memory_space<vmem>>, %arg4: memref<8x128xf32, #tpu.memory_space<vmem>>) attributes {dimension_semantics = [#tpu.dimension_semantics<parallel>, #tpu.dimension_semantics<arbitrary>], iteration_bounds = array<i64: 1, 1>, scalar_prefetch = 0 : i64, scratch_operands = 0 : i64, tpu.core_type = #tpu.core_type<tc>, window_params = [{transform_indices = @transform_0, window_bounds = array<i64: 16, 128>}, {transform_indices = @transform_1, window_bounds = array<i64: 16, 128>}, {transform_indices = @transform_2, window_bounds = array<i64: 8, 128>}]} {
    %c0_i32 = arith.constant 0 : i32
    %0 = arith.cmpi eq, %arg1, %c0_i32 : i32
    %1 = arith.extui %0 : i1 to i32
    %c0_i32_0 = arith.constant 0 : i32
    %2 = arith.cmpi ne, %1, %c0_i32_0 : i32
    scf.if %2 {
      %cst_12 = arith.constant 0.000000e+00 : f32
      %29 = vector.broadcast %cst_12 : f32 to vector<8x128xf32>
      %c0_13 = arith.constant 0 : index
      %c0_14 = arith.constant 0 : index
      %30 = vector.load %arg4[%c0_13, %c0_14] : memref<8x128xf32, #tpu.memory_space<vmem>>, vector<8x128xf32>
      tpu.vector_store %arg4[%c0_13, %c0_14], %29 {strides = array<i32>} : memref<8x128xf32, #tpu.memory_space<vmem>>, vector<8x128xf32>,
    } else {
    }
    %cst = arith.constant 0.000000e+00 : f32
    %3 = vector.broadcast %cst : f32 to vector<8x128xf32>
    %c0_i32_1 = arith.constant 0 : i32
    %c16_i32 = arith.constant 16 : i32
    %4 = arith.muli %c0_i32_1, %c16_i32 : i32
    %5 = tpu.assume_multiple %4, 16 : i32
    %6 = arith.index_cast %5 : i32 to index
    %c0 = arith.constant 0 : index
    %7 = vector.load %arg2[%6, %c0] : memref<16x128xf32, #tpu.memory_space<vmem>>, vector<16x128xf32>
    %8 = arith.index_cast %5 : i32 to index
    %c0_2 = arith.constant 0 : index
    %9 = vector.load %arg3[%8, %c0_2] : memref<16x128xf32, #tpu.memory_space<vmem>>, vector<16x128xf32>
    %10 = math.log %7 : vector<16x128xf32>
    %cst_3 = arith.constant -1.000000e+02 : f32
    %11 = vector.broadcast %cst_3 : f32 to vector<16x128xf32>
    %12 = arith.maximumf %10, %11 : vector<16x128xf32>
    %cst_4 = arith.constant 0.000000e+00 : f32
    %13 = vector.broadcast %cst_4 : f32 to vector<16x128xf32>
    %14 = arith.subf %13, %7 : vector<16x128xf32>
    %15 = math.log1p %14 : vector<16x128xf32>
    %cst_5 = arith.constant -1.000000e+02 : f32
    %16 = vector.broadcast %cst_5 : f32 to vector<16x128xf32>
    %17 = arith.maximumf %15, %16 : vector<16x128xf32>
    %18 = arith.subf %12, %17 : vector<16x128xf32>
    %19 = arith.mulf %9, %18 : vector<16x128xf32>
    %20 = arith.addf %17, %19 : vector<16x128xf32>
    %cst_6 = arith.constant 0.000000e+00 : f32
    %21 = vector.broadcast %cst_6 : f32 to vector<16x128xf32>
    %22 = arith.subf %21, %20 : vector<16x128xf32>
    %23 = vector.shape_cast %22 : vector<16x128xf32> to vector<2x8x128xf32>
    %cst_7 = arith.constant dense<0.000000e+00> : vector<8x128xf32>
    %24 = vector.multi_reduction <add>, %23, %cst_7 [0] : vector<2x8x128xf32> to vector<8x128xf32>
    %25 = arith.addf %3, %24 : vector<8x128xf32>
    %c1_i32 = arith.constant 1 : i32
    %c0_8 = arith.constant 0 : index
    %c0_9 = arith.constant 0 : index
    %26 = vector.load %arg4[%c0_8, %c0_9] : memref<8x128xf32, #tpu.memory_space<vmem>>, vector<8x128xf32>
    %27 = arith.addf %26, %25 : vector<8x128xf32>
    %c0_10 = arith.constant 0 : index
    %c0_11 = arith.constant 0 : index
    %28 = vector.load %arg4[%c0_10, %c0_11] : memref<8x128xf32, #tpu.memory_space<vmem>>, vector<8x128xf32>
    tpu.vector_store %arg4[%c0_10, %c0_11], %27 {strides = array<i32>} : memref<8x128xf32, #tpu.memory_space<vmem>>, vector<8x128xf32>,
    return
  }
  func.func @transform_0(%arg0: i32, %arg1: i32) -> (i32, i32) {
    %c1_i32 = arith.constant 1 : i32
    %0 = arith.muli %arg0, %c1_i32 : i32
    %1 = arith.addi %0, %arg1 : i32
    %c0_i32 = arith.constant 0 : i32
    %2 = arith.minsi %1, %c0_i32 : i32
    %c0_i32_0 = arith.constant 0 : i32
    %c0_i32_1 = arith.constant 0 : i32
    return %2, %c0_i32_0 : i32, i32
  }
  func.func @transform_1(%arg0: i32, %arg1: i32) -> (i32, i32) {
    %c1_i32 = arith.constant 1 : i32
    %0 = arith.muli %arg0, %c1_i32 : i32
    %1 = arith.addi %0, %arg1 : i32
    %c0_i32 = arith.constant 0 : i32
    %2 = arith.minsi %1, %c0_i32 : i32
    %c0_i32_0 = arith.constant 0 : i32
    %c0_i32_1 = arith.constant 0 : i32
    return %2, %c0_i32_0 : i32, i32
  }
  func.func @transform_2(%arg0: i32, %arg1: i32) -> (i32, i32) {
    %c0_i32 = arith.constant 0 : i32
    %c0_i32_0 = arith.constant 0 : i32
    return %arg0, %c0_i32 : i32, i32
  }
}

</mosaic_0001>

<bundles_post_ra>
// kernel: tpu_custom_call.1
= control target key start
LH: loop header
LB: loop body
LE: loop exit
PB: predicated region body
PF: predicated region fallthrough
CT: control target
= control target key end

     0   :  { %7 = vsyncpa [#allocation3], 0  ;;  %s272_s0 = inlined_call_operand.hbm [shape: f32[16,128], index: 0, kind: input, shape index: {}]   ;;  %s273_s1 = inlined_call_operand.hbm [shape: f32[16,128], index: 1, kind: input, shape index: {}]   ;;  %s274_s2 = inlined_call_operand.hbm [shape: f32[8,128], index: 2, kind: output, shape index: {}]  }
   0x1   :  { %8 = vsyncpa [#allocation6], 0 }
   0x2   :  { %9 = vsyncpa [#allocation4], 0  ;;  %s216_s9 = smov [#allocation2]   ;;  %s144_s13 = scalar_lea.hbm %s272_s0, 256 }
   0x3   :  { %s21_s10 = sshll.u32 %s216_s9, 4  ;;  %p145_p0 = scmp.ne.s32.totalorder %s272_s0, %s144_s13  ;;  %s22_s10 = int_to_ptr.vmem [resolvable:$true] %s21_s10 }
   0x4   :  { %p148_p1 = scmp.lt.u32.totalorder %s144_s13, %s272_s0 }
   0x6   :  { %p150_p2 = pnand %p148_p1, %p145_p0 }
   0x8   :  { %153 = shalt.err (!%p150_p2)
}
   0x9   :  { %s154_s18 = scalar_lea.vmem %s22_s10, 256  ;;  %p159_p4 = scmp.lt.s32.totalorder %s22_s10, %s22_s10 }
   0xa   :  { %p155_p3 = scmp.ne.s32.totalorder %s22_s10, %s154_s18  ;;  %p160_p5 = scmp.lt.s32.totalorder %s154_s18, %s154_s18 }
   0xc   :  { %p161_p6 = por %p160_p5, %p159_p4 }
   0xe   :  { %p162_p7 = pnand %p161_p6, %p155_p3 }
  0x10   :  { %165 = shalt.err (!%p162_p7)
}
  0x11   :  { %s217_s19 = smov 128   ;;  %s218_s20 = smov 8  }
  0x12   :  { %27 = dma.hbm_to_vmem [thread:$0]  %s272_s0, 256, %s22_s10, [#allocation3], %s217_s19, %s217_s19, %s218_s20  }
  0x13   :  { %s219_s23 = smov [#allocation5]   ;;  %s166_s27 = scalar_lea.hbm %s273_s1, 256 }
  0x14   :  { %s39_s24 = sshll.u32 %s219_s23, 4  ;;  %p167_p8 = scmp.ne.s32.totalorder %s273_s1, %s166_s27  ;;  %s40_s24 = int_to_ptr.vmem [resolvable:$true] %s39_s24 }
  0x15   :  { %p170_p9 = scmp.lt.u32.totalorder %s166_s27, %s273_s1 }
  0x17   :  { %p172_p10 = pnand %p170_p9, %p167_p8 }
  0x19   :  { %175 = shalt.err (!%p172_p10)
}
  0x1a   :  { %s176_s4 = scalar_lea.vmem %s40_s24, 256  ;;  %p181_p12 = scmp.lt.s32.totalorder %s40_s24, %s40_s24 }
  0x1b   :  { %p177_p11 = scmp.ne.s32.totalorder %s40_s24, %s176_s4  ;;  %p182_p13 = scmp.lt.s32.totalorder %s176_s4, %s176_s4 }
  0x1d   :  { %p183_p0 = por %p182_p13, %p181_p12 }
  0x1f   :  { %p184_p1 = pnand %p183_p0, %p177_p11 }
  0x21   :  { %187 = shalt.err (!%p184_p1)
}
  0x22   :  { %45 = dma.hbm_to_vmem [thread:$0]  %s273_s1, 256, %s40_s24, [#allocation6], %s217_s19, %s217_s19, %s218_s20  }
  0x23   :  { %210 = dma.done.wait [#allocation3], 256  }
  0x24   :  { %211 = vsyncadd [#allocation3], 4294967040 }
  0x25   :  { %212 = dma.done.wait [#allocation6], 256  }
  0x26   :  { %213 = vsyncadd [#allocation6], 4294967040  ;;  %v65_v0 = vld [vmem:[#allocation2] sm:$0xff]  ;;  %v66_v1 = vld [vmem:[#allocation2 + $0x8] sm:$0xff]  ;;  %s220_s1 = smov [#allocation7]  }
  0x27   :  { %136 = vlog2.f32 %v65_v0  ;;  %v75_v2 = vsub.f32 0.0, %v65_v0  ;;  %v76_v3 = vsub.f32 0.0, %v66_v1  ;;  %v67_v27 = vld [vmem:[#allocation5] sm:$0xff]  ;;  %v68_v29 = vld [vmem:[#allocation5 + $0x8] sm:$0xff]  ;;  %s116_s6 = sshll.u32 %s220_s1, 4  ;;  %s117_s6 = int_to_ptr.vmem [resolvable:$true] %s116_s6 }
  0x28   :  { %138 = vlog2.f32 %v66_v1  ;;  %s188_s7 = scalar_lea.vmem %s117_s6, 128  ;;  %p193_p3 = scmp.lt.s32.totalorder %s117_s6, %s117_s6 }
  0x29   :  { %v77_v4 = vadd.f32 1.0, %v75_v2  ;;  %v86_v5 = vadd.f32 1.0, %v76_v3  ;;  %v80_v6 = vmul.f32 -0.5, %v75_v2  ;;  %v89_v7 = vmul.f32 -0.5, %v76_v3  ;;  %p189_p2 = scmp.ne.s32.totalorder %s117_s6, %s188_s7  ;;  %p194_p4 = scmp.lt.s32.totalorder %s188_s7, %s188_s7 }
  0x2a   :  { %v83_v10 = vand.u32 2147483647, %v75_v2  ;;  %v92_v13 = vand.u32 2147483647, %v76_v3 }
  0x2b   :  { %140 = vlog2.f32 %v77_v4  ;;  %v81_v8 = vadd.f32 1.0, %v80_v6  ;;  %v90_v11 = vadd.f32 1.0, %v89_v7  ;;  %p195_p5 = por %p194_p4, %p193_p3 }
  0x2c   :  { %142 = vlog2.f32 %v86_v5  ;;  %vm84_vm0 = vcmp.lt.f32.partialorder %v83_v10, 0.0004427343  ;;  %vm93_vm1 = vcmp.lt.f32.partialorder %v92_v13, 0.0004427343 }
  0x2d   :  { %v82_v16 = vmul.f32 %v81_v8, %v75_v2  ;;  %v91_v18 = vmul.f32 %v90_v11, %v76_v3  ;;  %p196_p6 = pnand %p195_p5, %p189_p2 }
  0x31   :  { %v137_v9 = vpop.eup %136 }
  0x32   :  { %v139_v12 = vpop.eup %138  ;;  %v70_v14 = vmul.f32 0.6931472, %v137_v9 }
  0x33   :  { %v72_v15 = vmul.f32 0.6931472, %v139_v12 }
  0x34   :  { %v73_v21 = vmax.f32 %v70_v14, -100.0 }
  0x35   :  { %v141_v17 = vpop.eup %140  ;;  %v74_v23 = vmax.f32 %v72_v15, -100.0 }
  0x36   :  { %v143_v19 = vpop.eup %142  ;;  %v79_v20 = vmul.f32 0.6931472, %v141_v17 }
  0x37   :  { %v88_v22 = vmul.f32 0.6931472, %v143_v19 }
  0x38   :  { %v85_v24 = vsel %vm84_vm0, %v82_v16, %v79_v20 }
  0x39   :  { %v94_v25 = vsel %vm93_vm1, %v91_v18, %v88_v22  ;;  %v95_v26 = vmax.f32 %v85_v24, -100.0 }
  0x3a   :  { %v96_v28 = vmax.f32 %v94_v25, -100.0 }
  0x3b   :  { %v97_v30 = vsub.f32 %v73_v21, %v95_v26 }
  0x3c   :  { %v98_v31 = vsub.f32 %v74_v23, %v96_v28 }
  0x3d   :  { %v99_v32 = vmul.f32 %v97_v30, %v67_v27 }
  0x3e   :  { %v100_v33 = vmul.f32 %v98_v31, %v68_v29 }
  0x3f   :  { %v101_v34 = vadd.f32 %v99_v32, %v95_v26 }
  0x40   :  { %v102_v35 = vadd.f32 %v100_v33, %v96_v28 }
  0x41   :  { %v103_v36 = vsub.f32 0.0, %v101_v34 }
  0x42   :  { %v104_v37 = vsub.f32 0.0, %v102_v35 }
  0x44   :  { %v105_v38 = vadd.f32 %v104_v37, %v103_v36 }
  0x46   :  { %109 = vst [vmem:[#allocation7] sm:$0xff] %v105_v38 }
  0x47   :  { %199 = shalt.err (!%p196_p6)
}
  0x48   :  { %s200_s10 = scalar_lea.hbm %s274_s2, 128 }
  0x49   :  { %p201_p7 = scmp.ne.s32.totalorder %s274_s2, %s200_s10  ;;  %p204_p8 = scmp.lt.u32.totalorder %s200_s10, %s274_s2 }
  0x4b   :  { %p206_p9 = pnand %p204_p8, %p201_p7 }
  0x4d   :  { %209 = shalt.err (!%p206_p9)
}
  0x4e   :  { %119 = dma.vmem_to_hbm [thread:$0]  %s117_s6, 128, %s274_s2, [#allocation4]  }
  0x4f   :  { %214 = dma.done.wait [#allocation4], 128  }
  0x50   :  { %215 = vsyncadd [#allocation4], 4294967168 }
  0x51   :  { %123 = vsyncpa [#allocation3], 1 }
  0x52   :  { %124 = vsyncpa [#allocation6], 1 }
  0x53   :  { %125 = vsyncpa [#allocation4], 1 }

</bundles_post_ra>
